<compile_context>
chip_gen: v7x
topology: tpu7x:2x2x1
jax: 0.10.0
libtpu: 0.0.40
codegen_flags: <defaults>
</compile_context>

<pallas_src>
import functools
import math

import jax
import jax.numpy as jnp
from jax.experimental import pallas as pl
from jax.experimental.pallas import tpu as pltpu


def _se_kernel(x_ref, w1_ref, w2_ref, o_ref, *, inv_hw):
    # x_ref, o_ref: (TB, C, HW)  current batch tile, native dtype
    # w1_ref:       (Cr, C)      first FC weight  (PyTorch Linear layout)
    # w2_ref:       (C, Cr)      second FC weight (PyTorch Linear layout)

    # Squeeze: pooled mean, accumulated in f32 with 1/HW folded in.  The load
    # feeding the reduction is consumed immediately (streamed), so no
    # long-lived full-block value exists across the FC chain.
    y = jnp.sum(x_ref[...], axis=-1, dtype=jnp.float32) * inv_hw      # (TB, C)

    w1 = w1_ref[...].astype(jnp.float32)                              # (Cr, C)
    w2 = w2_ref[...].astype(jnp.float32)                              # (C, Cr)

    # Excitation: FC -> ReLU -> FC -> sigmoid (tiny, all f32).
    h = jnp.einsum("bc,rc->br", y, w1, preferred_element_type=jnp.float32)
    h = jnp.maximum(h, 0.0)                                           # (TB, Cr)
    g = jnp.einsum("br,cr->bc", h, w2, preferred_element_type=jnp.float32)
    gate = jax.nn.sigmoid(g).astype(o_ref.dtype)                      # (TB, C)

    # Scale: second streamed pass over the tile; the (TB, C, 1) gate is
    # lane-broadcast over HW (XLU slot, which has slack here).
    o_ref[...] = x_ref[...] * gate[:, :, None]


def _vmem_capacity_bytes():
    try:
        info = pltpu.get_tpu_info()
        cap = int(getattr(info, "vmem_capacity_bytes", 0) or 0)
        if cap > 0:
            return cap
    except Exception:
        pass
    return 64 << 20  # conservative default: v7x-sized VMEM


def _pick_batch_tile(B, bytes_per_batch_elem, vmem_cap):
    """Largest tb dividing B that fits the per-buffer budget and step policy."""
    small_vmem = vmem_cap <= (64 << 20) + (1 << 20)        # v7x-class part
    per_buffer_budget = (11 << 20) if small_vmem else (24 << 20)
    tb_cap = max(1, per_buffer_budget // max(1, bytes_per_batch_elem))

    divisors = [d for d in range(1, B + 1) if B % d == 0]
    cands = [d for d in divisors if d <= tb_cap] or [1]

    even_steps = [d for d in cands if (B // d) >= 2 and (B // d) % 2 == 0]
    multi_step = [d for d in cands if (B // d) >= 2]

    if small_vmem and even_steps:
        tb = max(even_steps)        # 2 TensorCores: even step count >= 2
    elif multi_step:
        tb = max(multi_step)        # single TC: >= 2 steps for pipeline overlap
    else:
        tb = max(cands)
    return tb, small_vmem


def se_layer(x, w1, w2):
    """x: (B, C, H, W) NCHW. w1: (C//r, C), w2: (C, C//r) — PyTorch Linear layout."""
    B, C, H, W = x.shape
    Cr = w1.shape[0]
    HW = H * W

    itemsize = jnp.dtype(x.dtype).itemsize
    # VMEM footprint per batch element: lane dim pads to a multiple of 128 in
    # VMEM even though the HBM side of the DMA stays contiguous/unpadded.
    hw_vmem = ((HW + 127) // 128) * 128
    bytes_per_elem = C * hw_vmem * itemsize

    vmem_cap = _vmem_capacity_bytes()
    tb, small_vmem = _pick_batch_tile(B, bytes_per_elem, vmem_cap)

    x_flat = x.reshape(B, C, HW)

    # Explicit VMEM budget: in + out blocks double-buffered, plus weights.
    block_vmem = tb * bytes_per_elem
    w_bytes = (w1.size * jnp.dtype(w1.dtype).itemsize
               + w2.size * jnp.dtype(w2.dtype).itemsize)
    vmem_limit = 4 * block_vmem + 4 * w_bytes + (2 << 20)
    cap = (50 << 20) if small_vmem else (100 << 20)
    vmem_limit = int(min(max(vmem_limit, 8 << 20), cap))

    kernel = functools.partial(_se_kernel, inv_hw=1.0 / HW)

    out_flat = pl.pallas_call(
        kernel,
        out_shape=jax.ShapeDtypeStruct((B, C, HW), x.dtype),
        grid_spec=pltpu.PrefetchScalarGridSpec(
            num_scalar_prefetch=0,
            grid=(B // tb,),
            in_specs=[
                pl.BlockSpec((tb, C, HW), lambda b: (b, 0, 0)),
                pl.BlockSpec((Cr, C), lambda b: (0, 0)),
                pl.BlockSpec((C, Cr), lambda b: (0, 0)),
            ],
            out_specs=pl.BlockSpec((tb, C, HW), lambda b: (b, 0, 0)),
        ),
        compiler_params=pltpu.CompilerParams(
            dimension_semantics=("parallel",),
            vmem_limit_bytes=vmem_limit,
        ),
    )(x_flat, w1, w2)

    return out_flat.reshape(B, C, H, W)


def _reference(x, w1, w2):
    # Pure-JAX reference mirroring the PyTorch forward.
    y = jnp.mean(x, axis=(2, 3))                          # (B, C)
    y = jnp.maximum(y @ w1.T, 0.0)                        # (B, Cr)
    y = jax.nn.sigmoid(y @ w2.T)                          # (B, C)
    return x * y[:, :, None, None]


if __name__ == "__main__":
    reduction = 16
    # Two small configs: one lane-aligned (HW=256), one non-aligned (HW=49).
    for (B, C, H, W) in [(4, 32, 16, 16), (4, 32, 7, 7)]:
        Cr = C // reduction

        key = jax.random.PRNGKey(0)
        kx, k1, k2 = jax.random.split(key, 3)

        x = jax.random.normal(kx, (B, C, H, W), dtype=jnp.float32)
        # Deterministic weight init (Linear-style scale), no checkpoint loading.
        w1 = jax.random.normal(k1, (Cr, C), dtype=jnp.float32) * (1.0 / math.sqrt(C))
        w2 = jax.random.normal(k2, (C, Cr), dtype=jnp.float32) * (1.0 / math.sqrt(Cr))

        out = jax.block_until_ready(se_layer(x, w1, w2))

        ref = _reference(x, w1, w2)
        assert out.shape == (B, C, H, W)
        assert jnp.allclose(out, ref, atol=1e-5, rtol=1e-5), f"mismatch at {(B, C, H, W)}"

    print("KERNEL_OK")
</pallas_src>

<mosaic_0001>
module attributes {stable_mosaic.version = 11 : i64} {
  func.func @_se_kernel(%arg0: i32, %arg1: memref<2x32x256xf32, #tpu.memory_space<vmem>>, %arg2: memref<2x32xf32, #tpu.memory_space<vmem>>, %arg3: memref<32x2xf32, #tpu.memory_space<vmem>>, %arg4: memref<2x32x256xf32, #tpu.memory_space<vmem>>) attributes {dimension_semantics = [#tpu.dimension_semantics<parallel>], iteration_bounds = array<i64: 2>, scalar_prefetch = 0 : i64, scratch_operands = 0 : i64, tpu.core_type = #tpu.core_type<tc>, window_params = [{transform_indices = @transform_0, window_bounds = array<i64: 2, 32, 256>}, {pipeline_mode = #tpu.pipeline_mode<synchronous>, transform_indices = @transform_1, window_bounds = array<i64: 2, 32>}, {pipeline_mode = #tpu.pipeline_mode<synchronous>, transform_indices = @transform_2, window_bounds = array<i64: 32, 2>}, {transform_indices = @transform_3, window_bounds = array<i64: 2, 32, 256>}]} {
    %c0 = arith.constant 0 : index
    %c0_0 = arith.constant 0 : index
    %c0_1 = arith.constant 0 : index
    %0 = vector.load %arg1[%c0, %c0_0, %c0_1] : memref<2x32x256xf32, #tpu.memory_space<vmem>>, vector<2x32x256xf32>
    %cst = arith.constant dense<0.000000e+00> : vector<2x32xf32>
    %1 = vector.multi_reduction <add>, %0, %cst [2] : vector<2x32x256xf32> to vector<2x32xf32>
    %cst_2 = arith.constant 3.906250e-03 : f32
    %2 = vector.broadcast %cst_2 : f32 to vector<2x32xf32>
    %3 = arith.mulf %1, %2 : vector<2x32xf32>
    %c0_3 = arith.constant 0 : index
    %c0_4 = arith.constant 0 : index
    %4 = vector.load %arg2[%c0_3, %c0_4] : memref<2x32xf32, #tpu.memory_space<vmem>>, vector<2x32xf32>
    %c0_5 = arith.constant 0 : index
    %c0_6 = arith.constant 0 : index
    %5 = vector.load %arg3[%c0_5, %c0_6] : memref<32x2xf32, #tpu.memory_space<vmem>>, vector<32x2xf32>
    "tpu.trace_start"() <{level = 10 : i32, message = "bc,rc->br"}> : () -> ()
    %cst_7 = arith.constant dense<0.000000e+00> : vector<2x2xf32>
    %6 = tpu.matmul %3, %4, %cst_7 {dimension_numbers = #tpu.dot_dimension_numbers<[1], [1], [0], [0], [0, 0, 1, 0], [], []>} : vector<2x32xf32>, vector<2x32xf32>, vector<2x2xf32> -> vector<2x2xf32>
    "tpu.trace_stop"() : () -> ()
    %cst_8 = arith.constant 0.000000e+00 : f32
    %7 = vector.broadcast %cst_8 : f32 to vector<2x2xf32>
    %8 = arith.maximumf %6, %7 : vector<2x2xf32>
    "tpu.trace_start"() <{level = 10 : i32, message = "br,cr->bc"}> : () -> ()
    %cst_9 = arith.constant dense<0.000000e+00> : vector<2x32xf32>
    %9 = tpu.matmul %8, %5, %cst_9 {dimension_numbers = #tpu.dot_dimension_numbers<[1], [1], [0], [0], [0, 0, 1, 0], [], []>} : vector<2x2xf32>, vector<32x2xf32>, vector<2x32xf32> -> vector<2x32xf32>
    "tpu.trace_stop"() : () -> ()
    %10 = arith.negf %9 : vector<2x32xf32>
    %11 = math.exp %10 : vector<2x32xf32>
    %cst_10 = arith.constant 1.000000e+00 : f32
    %12 = vector.broadcast %cst_10 : f32 to vector<2x32xf32>
    %13 = arith.addf %12, %11 : vector<2x32xf32>
    %14 = arith.divf %12, %13 : vector<2x32xf32>
    %c0_11 = arith.constant 0 : index
    %c0_12 = arith.constant 0 : index
    %c0_13 = arith.constant 0 : index
    %15 = vector.load %arg1[%c0_11, %c0_12, %c0_13] : memref<2x32x256xf32, #tpu.memory_space<vmem>>, vector<2x32x256xf32>
    %16 = vector.shape_cast %14 : vector<2x32xf32> to vector<2x32x1xf32>
    %17 = vector.broadcast %16 : vector<2x32x1xf32> to vector<2x32x256xf32>
    %18 = arith.mulf %15, %17 : vector<2x32x256xf32>
    %c0_14 = arith.constant 0 : index
    %c0_15 = arith.constant 0 : index
    %c0_16 = arith.constant 0 : index
    %19 = vector.load %arg4[%c0_14, %c0_15, %c0_16] : memref<2x32x256xf32, #tpu.memory_space<vmem>>, vector<2x32x256xf32>
    tpu.vector_store %arg4[%c0_14, %c0_15, %c0_16], %18 {strides = array<i32>} : memref<2x32x256xf32, #tpu.memory_space<vmem>>, vector<2x32x256xf32>,
    return
  }
  func.func @transform_0(%arg0: i32) -> (i32, i32, i32) {
    %c0_i32 = arith.constant 0 : i32
    %c0_i32_0 = arith.constant 0 : i32
    %c0_i32_1 = arith.constant 0 : i32
    return %arg0, %c0_i32, %c0_i32_0 : i32, i32, i32
  }
  func.func @transform_1(%arg0: i32) -> (i32, i32) {
    %c0_i32 = arith.constant 0 : i32
    %c0_i32_0 = arith.constant 0 : i32
    %c0_i32_1 = arith.constant 0 : i32
    return %c0_i32, %c0_i32_0 : i32, i32
  }
  func.func @transform_2(%arg0: i32) -> (i32, i32) {
    %c0_i32 = arith.constant 0 : i32
    %c0_i32_0 = arith.constant 0 : i32
    %c0_i32_1 = arith.constant 0 : i32
    return %c0_i32, %c0_i32_0 : i32, i32
  }
  func.func @transform_3(%arg0: i32) -> (i32, i32, i32) {
    %c0_i32 = arith.constant 0 : i32
    %c0_i32_0 = arith.constant 0 : i32
    %c0_i32_1 = arith.constant 0 : i32
    return %arg0, %c0_i32, %c0_i32_0 : i32, i32, i32
  }
}

</mosaic_0001>

<bundles_post_ra>
// kernel: tpu_custom_call.1
= control target key start
LH: loop header
LB: loop body
LE: loop exit
PB: predicated region body
PF: predicated region fallthrough
CT: control target
= control target key end

     0   :  { %8 = vsyncpa [#allocation3], 0  ;;  %s1156_s0 = inlined_call_operand.hbm [shape: f32[4,32,256], index: 0, kind: input, shape index: {}]   ;;  %s1157_s1 = inlined_call_operand.vmem [shape: f32[2,32], index: 1, kind: input, shape index: {}]   ;;  %s1158_s2 = inlined_call_operand.vmem [shape: f32[32,2], index: 2, kind: input, shape index: {}]   ;;  %s1159_s3 = inlined_call_operand.hbm [shape: f32[4,32,256], index: 3, kind: output, shape index: {}]  }
   0x1   :  { %10 = vsyncpa [#allocation3 + $0x1], 0 }
   0x2   :  { %11 = vsyncpa [#allocation4], 0 }
   0x3   :  { %13 = vsyncpa [#allocation4 + $0x1], 0  ;;  %s887_s12 = smov 0   ;;  %s889_s13 = smov 0  }
   0x4   :  { %s891_s14 = smov 0   ;;  %s893_s15 = smov 0  }
   0x5 LB: > { %s908_s16 = sadd.s32 4294967295, %s856_s15   ;;  %s644_s17 = sadd.s32 4294967294, %s856_s15   ;;  %s856_s15 = sphi %s893_s15, %s1172_s15   ;;  %s852_s14 = sphi %s891_s14, %s1171_s14   ;;  %s848_s13 = sphi %s889_s13, %s1170_s13   ;;  %s844_s12 = sphi %s887_s12, %s1169_s12  }
   0x6   : > { %s912_s18 = sadd.s32 1, %s856_s15   ;;  %s26_s19 = sadd.s32 1, %s852_s14 }
   0x7   : > { %s23_s20 = ssub.s32 %s856_s15, %s912_s18  ;;  %p33_p0 = scmp.ne.s32.totalorder %s852_s14, %s848_s13 }
   0x8   : > { %p24_p1 = scmp.eq.s32.totalorder %s23_s20, 0  ;;  %p34_p2 = scmp.eq.s32.totalorder %s856_s15, 0 }
   0x9   : > { %p39_p3 = scmp.ne.s32.totalorder %s848_s13, %s844_s12  ;;  %p40_p4 = scmp.eq.s32.totalorder %s908_s16, 0 }
   0xa   : > { %s924_s21 = scalar_select %p24_p1, %s852_s14, %s26_s19  }
   0xb   : > { %p926_p5 = por %p34_p2, %p33_p0  ;;  %p930_p6 = por %p40_p4, %p39_p3 }
   0xc   : > { %p105_p7 = scmp.eq.s32.totalorder %s908_s16, 1  ;;  %p111_p8 = scmp.eq.s32.totalorder %s644_s17, 1 }
   0xd   : > { %p715_p10 = scmp.lt.s32.totalorder %s856_s15, 2  ;;  %s137_s26 = sand.u32 1, %s852_s14  }
   0xe   : > { %p937_p11 = por %p105_p7, %p33_p0  ;;  %p941_p12 = por %p111_p8, %p39_p3 }
   0xf   : > { %s669_s27 = sshll.u32 %s856_s15, 11  ;;  %s647_s28 = sshll.u32 %s137_s26, 7 }
  0x10   : > { %s1163_s24 = scalar_select %p937_p11, 1, 0 }
  0x11   : > { %s1164_s25 = scalar_select %p941_p12, 1, 0 }
  0x12   : > { %s950_s4 = scalar_lea.hbm %s1156_s0, %s669_s27  ;;  %s141_s5 = scalar_lea.vmem [#allocation2], %s647_s28 }
  0x13   : > { %s149_s6 = sshll.u32 %s141_s5, 4  ;;  %p954_p13 = pnand %p715_p10, %p926_p5  ;;  %s958_s6 = int_to_ptr.vmem [resolvable:$true] %s149_s6 }
  0x14   : > { %s960_s8 = scalar_lea.sflag [#allocation3], %s137_s26  ;;  %s760_s9 = scalar_lea.hbm %s950_s4, 2048 }
  0x15   : > { %p761_p0 = scmp.ne.s32.totalorder %s950_s4, %s760_s9  ;;  %p762_p1 = pneg %p954_p13 }
  0x16   : > { %s765_s17 = scalar_lea.hbm %s1156_s0, 4096  ;;  %p766_p4 = scmp.lt.u32.totalorder %s950_s4, %s1156_s0 }
  0x17   : > { %p763_p2 = pnand %p762_p1, %p761_p0  ;;  %p767_p5 = scmp.lt.u32.totalorder %s765_s17, %s760_s9 }
  0x18   : > { %p769_p8 = scmp.lt.u32.totalorder %s760_s9, %s950_s4 }
  0x19   : > { %p764_p3 = pneg %p763_p2  ;;  %p768_p7 = por %p767_p5, %p766_p4 }
  0x1b   : > { %p770_p10 = por %p769_p8, %p768_p7 }
  0x1d   : > { %p771_p9 = pnand %p770_p10, %p764_p3 }
  0x1f   : > { %774 = shalt.err (!%p771_p9)
}
  0x20   : > { %s775_s22 = scalar_lea.vmem %s958_s6, 2048  ;;  %s858_s26 = smov [#allocation2]  }
  0x21   : > { %p776_p0 = scmp.ne.s32.totalorder %s958_s6, %s775_s22  ;;  %s780_s27 = sshll.u32 %s858_s26, 4  ;;  %s781_s27 = int_to_ptr.vmem [resolvable:$false] %s780_s27 }
  0x22   : > { %s782_s28 = scalar_lea.vmem %s781_s27, 4096  ;;  %p783_p11 = scmp.lt.s32.totalorder %s958_s6, %s781_s27 }
  0x23   : > { %p778_p2 = pnand %p776_p0, %p762_p1  ;;  %p784_p4 = scmp.lt.s32.totalorder %s782_s28, %s775_s22 }
  0x25   : > { %p779_p12 = pneg %p778_p2  ;;  %p785_p5 = por %p784_p4, %p783_p11 }
  0x27   : > { %p786_p7 = pnand %p785_p5, %p779_p12 }
  0x29   : > { %789 = shalt.err (!%p786_p7)
}
  0x2a   : > { %s859_s29 = smov 256   ;;  %s860_s30 = smov 16  }
  0x2b   : > { %710 = dma.hbm_to_vmem [thread:$0]  (!%p954_p13), %s950_s4, 2048, %s958_s6, %s960_s8, %s859_s29, %s859_s29, %s860_s30  }
  0x2c   : > { %p651_p9 = scmp.ge.s32.totalorder %s856_s15, 1  ;;  %p157_p1 = scmp.lt.s32.totalorder %s856_s15, 3 }
  0x2e   : > { %p158_p3 = pnand %p651_p9, %p157_p1 }
  0x2f   : > { %s991_s5 = sand.u32 (!%p158_p3), 1, %s848_s13  }
  0x30   : > { %161 = sbr.rel (%p158_p3) target bundleno = 822 (0x336), region = 32  ;;  %s652_s9 = sshll.u32 (!%p158_p3), %s991_s5, 7 }
  0x31   : > { %s164_s10 = scalar_lea.sflag (!%p158_p3), [#allocation3], %s991_s5  ;;  %s167_s11 = scalar_lea.vmem (!%p158_p3), [#allocation2], %s652_s9 }
  0x37   : > { %835 = dma.done.wait (%p930_p6), %s164_s10, 2048  }
  0x38   : > { %837 = vsyncadd (%p930_p6), %s164_s10, 4294965248  ;;  %v1001_v0 = vld [vmem:[%s167_s11 + $0x40] sm:$0xff]  ;;  %v1003_v1 = vld [vmem:[%s167_s11 + $0x48] sm:$0xff]  ;;  %v861_v24 = vmov 0.0   ;;  %vm301_vm0 = vcmask 261120   ;;  %vm862_vm1 = vmmov 0   ;;  %v253_v33 = vlaneseq }
  0x39   : > { %v1005_v2 = vld [vmem:[%s167_s11] sm:$0xff]  ;;  %v220_v3 = vadd.f32 %v1003_v1, %v1001_v0  ;;  %v1009_v4 = vld [vmem:[%s167_s11 + $0x8] sm:$0xff]  ;;  %v1011_v5 = vld [vmem:[%s167_s11 + $0x50] sm:$0xff]  ;;  %679 = vmatprep.subr.mxu0 %v861_v24  ;;  %681 = vmatprep.mubr.msk.f32.mxu0 %vm862_vm1, %v861_v24  ;;  %vm378_vm2 = vcmask 15360   ;;  %v863_v28 = vmov 0.0|0.0   ;;  %vm264_vm4 = vcmask 130112  }
  0x3a   : > { %v1013_v6 = vld [vmem:[%s167_s11 + $0x58] sm:$0xff]  ;;  %v208_v7 = vadd.f32 %v1009_v4, %v1005_v2  ;;  %v1017_v8 = vld [vmem:[%s167_s11 + $0x10] sm:$0xff]  ;;  %v1025_v12 = vld [vmem:[%s167_s11 + $0x60] sm:$0xff]  ;;  %692 = vmatprep.mubr.msk.f32.mxu1 %vm862_vm1, %v861_v24  ;;  %695 = vmatprep.subr.bf16.mxu1 %v863_v28  ;;  %v254_v35 = vand.u32 127, %v253_v33  ;;  %v256_v40 = vshrl.u32 %v253_v33, 7  ;;  %vm271_vm5 = vcmask 195712  }
  0x3b   : > { %v1019_v9 = vld [vmem:[%s167_s11 + $0x18] sm:$0xff]  ;;  %221 = vadd.xlane.f32.xlu1 %v220_v3  ;;  %v223_v10 = vadd.f32 %v1013_v6, %v1011_v5  ;;  %v1027_v13 = vld [vmem:[%s167_s11 + $0x68] sm:$0xff]  ;;  %v1029_v14 = vld [vmem:[%s167_s11 + $0x20] sm:$0xff]  ;;  %vm278_vm6 = vcmask 261312   ;;  %vm299_vm7 = vcmask 1041409   ;;  %s1075_s27 = scalar_lea.vmem [#allocation5], %s652_s9 }
  0x3c   : > { %209 = vadd.xlane.f32.xlu0 %v208_v7  ;;  %v211_v11 = vadd.f32 %v1019_v9, %v1017_v8  ;;  %v1031_v15 = vld [vmem:[%s167_s11 + $0x28] sm:$0xff]  ;;  %v226_v16 = vadd.f32 %v1027_v13, %v1025_v12  ;;  %v1037_v18 = vld [vmem:[%s167_s11 + $0x70] sm:$0xff]  ;;  %v1039_v19 = vld [vmem:[%s167_s11 + $0x78] sm:$0xff]  ;;  %v259_v37 = vadd.s32 4294967288, %v254_v35  ;;  %v266_v39 = vadd.s32 4294967280, %v254_v35  ;;  %s671_s28 = sshll.u32 %s908_s16, 11 }
  0x3d   : > { %v214_v17 = vadd.f32 %v1031_v15, %v1029_v14  ;;  %v1041_v20 = vld [vmem:[%s167_s11 + $0x30] sm:$0xff]  ;;  %v1043_v21 = vld [vmem:[%s167_s11 + $0x38] sm:$0xff]  ;;  %v229_v22 = vadd.f32 %v1039_v19, %v1037_v18  ;;  %v240_v25 = vld [vmem:[%s1157_s1] sm:$0x3]  ;;  %v273_v44 = vadd.s32 4294967272, %v254_v35  ;;  %v257_v48 = vsub.s32 %v254_v35, %v256_v40  ;;  %s571_s29 = sshll.u32 %s1075_s27, 4  ;;  %s1106_s10 = scalar_lea.hbm %s1159_s3, %s671_s28  ;;  %s1108_s29 = int_to_ptr.vmem [resolvable:$true] %s571_s29 }
  0x3e   : > { %v217_v23 = vadd.f32 %v1043_v21, %v1041_v20  ;;  %680 = vmatpush3.xpose.msk.msra.mxu0 %vm301_vm0, %v240_v25  ;;  %v241_v26 = vld [vmem:[%s1158_s2] sm:$0xff]  ;;  %v242_v27 = vld [vmem:[%s1158_s2 + $0x8] sm:$0xff]  ;;  %vm697_vm3 = vmpackc.low %vm378_vm2, %vm378_vm2  ;;  %v262_v42 = vsub.s32 %v259_v37, %v256_v40  ;;  %v269_v46 = vsub.s32 %v266_v39, %v256_v40  ;;  %v507_v37 = vsub.s32 1, %v256_v40  ;;  %s557_s16 = scalar_lea.sflag [#allocation4], %s991_s5  ;;  %s790_s11 = scalar_lea.vmem %s1108_s29, 2048 }
  0x3f   : > { %224 = vadd.xlane.f32.xlu1 %v223_v10  ;;  %v696_v29 = vpack.c.bf16 %v242_v27, %v241_v26  ;;  %v243_v30 = vld [vmem:[%s1158_s2 + $0x10] sm:$0xff]  ;;  %v244_v31 = vld [vmem:[%s1158_s2 + $0x18] sm:$0xff]  ;;  %v276_v55 = vsub.s32 %v273_v44, %v256_v40  ;;  %p791_p6 = scmp.ne.s32.totalorder %s1108_s29, %s790_s11  ;;  %p1166_p11 = scmp.ne.s32.totalorder %s1163_s24, 0 }
  0x40   : > { %212 = vadd.xlane.f32.xlu0 %v211_v11  ;;  %v700_v32 = vpack.c.bf16 %v244_v31, %v243_v30  ;;  %s864_s23 = smov [#allocation5]  }
  0x41   : > { %698 = vmatpush3.bf16.xpose.msk.msra.mxu1 %vm697_vm3, %v696_v29  ;;  %p792_p12 = pnand %p791_p6, %p1166_p11  ;;  %s794_s4 = sshll.u32 %s864_s23, 4  ;;  %s795_s4 = int_to_ptr.vmem [resolvable:$false] %s794_s4 }
  0x42   : > { %699 = vmatprep.subr.bf16.mxu1 %v863_v28  ;;  %s796_s6 = scalar_lea.vmem %s795_s4, 4096  ;;  %p797_p8 = scmp.lt.s32.totalorder %s1108_s29, %s795_s4 }
  0x43   : > { %227 = vadd.xlane.f32.xlu1 %v226_v16  ;;  %p793_p13 = pneg %p792_p12  ;;  %p798_p10 = scmp.lt.s32.totalorder %s796_s6, %s790_s11 }
  0x44   : > { %215 = vadd.xlane.f32.xlu0 %v214_v17 }
  0x45   : > { %p799_p0 = por %p798_p10, %p797_p8 }
  0x47   : > { %230 = vadd.xlane.f32.xlu1 %v229_v22  ;;  %p800_p2 = pnand %p799_p0, %p793_p13 }
  0x48   : > { %218 = vadd.xlane.f32.xlu0 %v217_v23 }
  0x49   : > { %702 = vmatpush3.bf16.xpose.msk.msra.mxu1 %vm697_vm3, %v700_v32 }
  0xc8   : > { %v222_v34 = vpop.xlane.xlu1 %221 }
  0xc9   : > { %v210_v36 = vpop.xlane.xlu0 %209  ;;  %v236_v49 = vmul.f32 0.00390625, %v222_v34  ;;  %v488_v34 = vsub.s32 0, %v256_v40 }
  0xca   : > { %v232_v52 = vmul.f32 0.00390625, %v210_v36 }
  0xcb   : > { %v283_v59 = vrot.slane %v236_v49, %v257_v48 }
  0xcc   : > { %v225_v38 = vpop.xlane.xlu1 %224  ;;  %v258_v63 = vrot.slane %v232_v52, %v257_v48 }
  0xcd   : > { %v213_v41 = vpop.xlane.xlu0 %212  ;;  %v237_v43 = vmul.f32 0.00390625, %v225_v38 }
  0xce   : > { %v233_v45 = vmul.f32 0.00390625, %v213_v41 }
  0xcf   : > { %v287_v54 = vrot.slane %v237_v43, %v262_v42 }
  0xd0   : > { %v228_v47 = vpop.xlane.xlu1 %227  ;;  %v263_v56 = vrot.slane %v233_v45, %v262_v42 }
  0xd1   : > { %v238_v50 = vmul.f32 0.00390625, %v228_v47  ;;  %v216_v51 = vpop.xlane.xlu0 %215  ;;  %v288_v7 = vsel %vm264_vm4, %v287_v54, %v283_v59 }
  0xd2   : > { %v234_v53 = vmul.f32 0.00390625, %v216_v51  ;;  %v265_v11 = vsel %vm264_vm4, %v263_v56, %v258_v63 }
  0xd3   : > { %v292_v57 = vrot.slane %v238_v50, %v269_v46 }
  0xd4   : > { %v231_v58 = vpop.xlane.xlu1 %230  ;;  %v270_v60 = vrot.slane %v234_v53, %v269_v46 }
  0xd5   : > { %v239_v61 = vmul.f32 0.00390625, %v231_v58  ;;  %v219_v62 = vpop.xlane.xlu0 %218  ;;  %v293_v16 = vsel %vm271_vm5, %v292_v57, %v288_v7 }
  0xd6   : > { %v235_v3 = vmul.f32 0.00390625, %v219_v62  ;;  %v272_v22 = vsel %vm271_vm5, %v270_v60, %v265_v11 }
  0xd7   : > { %v297_v10 = vrot.slane %v239_v61, %v276_v55 }
  0xd8   : > { %v277_v17 = vrot.slane %v235_v3, %v276_v55 }
  0xd9   : > { %v298_v23 = vsel %vm278_vm6, %v297_v10, %v293_v16 }
  0xda   : > { %v279_v24 = vsel %vm278_vm6, %v277_v17, %v272_v22 }
  0xdb   : > { %v300_v25 = vsel %vm299_vm7, %v298_v23, %v279_v24 }
  0xdc   : > { %682 = vmatmul.mubr.msk.f32.vlgmr.msra.gmra.mrb[0].mxu0 %vm301_vm0, %v300_v25 }
 0x1af   : > { %v373_v26 = vpop.f32.mrb[0].mxu0 }
 0x1b0   : > { %v377_v27 = vmax.f32 %v373_v26, 0.0  ;;  %v683_v28 = vpop.f32.mrb[1].mxu0 }
 0x1b2   : > { %693 = vmatmul.mubr.msk.f32.vlgmr.msra.gmra.mrb[0].mxu1 %vm378_vm2, %v377_v27 }
 0x285   : > { %v460_v29 = vpop.f32.mrb[0].mxu1 }
 0x286   : > { %v661_v30 = vmul.f32 -1.442695, %v460_v29  ;;  %v694_v31 = vpop.f32.mrb[1].mxu1 }
 0x288   : > { %756 = vpow2.f32 %v661_v30 }
 0x292   : > { %v757_v32 = vpop.eup %756 }
 0x293   : > { %v467_v33 = vadd.f32 1.0, %v757_v32 }
 0x295   : > { %758 = vrcp.f32 %v467_v33 }
 0x29f   : > { %v759_v35 = vpop.eup %758 }
 0x2a0   : > { %v489_v36 = vrot.slane %v759_v35, %v488_v34  ;;  %v508_v38 = vrot.slane %v759_v35, %v507_v37 }
 0x2a2   : > { %495 = vbcast.lane.b32.xlu1 %v489_v36, 264  ;;  %491 = vbcast.lane.b32.xlu0 %v489_v36, 256 }
 0x2a6   : > { %499 = vbcast.lane.b32.xlu1 %v489_v36, 272  ;;  %510 = vbcast.lane.b32.xlu0 %v508_v38, 256 }
 0x2aa   : > { %503 = vbcast.lane.b32.xlu1 %v489_v36, 280  ;;  %518 = vbcast.lane.b32.xlu0 %v508_v38, 272 }
 0x2ae   : > { %514 = vbcast.lane.b32.xlu1 %v508_v38, 264 }
 0x2b2   : > { %522 = vbcast.lane.b32.xlu1 %v508_v38, 280 }
 0x314   : > { %v496_v39 = vpop.permute.xlu1 %495  ;;  %v492_v41 = vpop.permute.xlu0 %491 }
 0x315   : > { %v526_v42 = vmul.f32 %v496_v39, %v1017_v8  ;;  %v527_v43 = vmul.f32 %v496_v39, %v1019_v9  ;;  %v524_v44 = vmul.f32 %v492_v41, %v1005_v2  ;;  %v525_v40 = vmul.f32 %v492_v41, %v1009_v4 }
 0x317   : > { %542 = vst [vmem:[%s1075_s27 + $0x10] sm:$0xff] %v526_v42  ;;  %543 = vst [vmem:[%s1075_s27 + $0x18] sm:$0xff] %v527_v43 }
 0x318   : > { %540 = vst [vmem:[%s1075_s27] sm:$0xff] %v524_v44  ;;  %541 = vst [vmem:[%s1075_s27 + $0x8] sm:$0xff] %v525_v40  ;;  %v500_v8 = vpop.permute.xlu1 %499  ;;  %v511_v2 = vpop.permute.xlu0 %510 }
 0x319   : > { %v528_v4 = vmul.f32 %v500_v8, %v1029_v14  ;;  %v529_v9 = vmul.f32 %v500_v8, %v1031_v15  ;;  %v532_v45 = vmul.f32 %v511_v2, %v1001_v0  ;;  %v533_v46 = vmul.f32 %v511_v2, %v1003_v1 }
 0x31b   : > { %544 = vst [vmem:[%s1075_s27 + $0x20] sm:$0xff] %v528_v4  ;;  %545 = vst [vmem:[%s1075_s27 + $0x28] sm:$0xff] %v529_v9 }
 0x31c   : > { %548 = vst [vmem:[%s1075_s27 + $0x40] sm:$0xff] %v532_v45  ;;  %549 = vst [vmem:[%s1075_s27 + $0x48] sm:$0xff] %v533_v46  ;;  %v504_v47 = vpop.permute.xlu1 %503  ;;  %v519_v48 = vpop.permute.xlu0 %518 }
 0x31d   : > { %v530_v14 = vmul.f32 %v504_v47, %v1041_v20  ;;  %v531_v49 = vmul.f32 %v504_v47, %v1043_v21  ;;  %v536_v15 = vmul.f32 %v519_v48, %v1025_v12  ;;  %v537_v0 = vmul.f32 %v519_v48, %v1027_v13 }
 0x31f   : > { %546 = vst [vmem:[%s1075_s27 + $0x30] sm:$0xff] %v530_v14  ;;  %547 = vst [vmem:[%s1075_s27 + $0x38] sm:$0xff] %v531_v49 }
 0x320   : > { %552 = vst [vmem:[%s1075_s27 + $0x60] sm:$0xff] %v536_v15  ;;  %553 = vst [vmem:[%s1075_s27 + $0x68] sm:$0xff] %v537_v0  ;;  %v515_v1 = vpop.permute.xlu1 %514 }
 0x321   : > { %v534_v50 = vmul.f32 %v515_v1, %v1011_v5  ;;  %v535_v51 = vmul.f32 %v515_v1, %v1013_v6 }
 0x323   : > { %550 = vst [vmem:[%s1075_s27 + $0x50] sm:$0xff] %v534_v50  ;;  %551 = vst [vmem:[%s1075_s27 + $0x58] sm:$0xff] %v535_v51 }
 0x324   : > { %v523_v12 = vpop.permute.xlu1 %522 }
 0x325   : > { %v538_v5 = vmul.f32 %v523_v12, %v1037_v18  ;;  %v539_v13 = vmul.f32 %v523_v12, %v1039_v19 }
 0x327   : > { %554 = vst [vmem:[%s1075_s27 + $0x70] sm:$0xff] %v538_v5  ;;  %555 = vst [vmem:[%s1075_s27 + $0x78] sm:$0xff] %v539_v13 }
 0x328   : > { %803 = shalt.err (!%p800_p2)
}
 0x329   : > { %s804_s7 = scalar_lea.hbm %s1106_s10, 2048  ;;  %s808_s19 = scalar_lea.hbm %s1159_s3, 4096 }
 0x32a   : > { %p805_p4 = scmp.ne.s32.totalorder %s1106_s10, %s804_s7  ;;  %p809_p9 = scmp.lt.u32.totalorder %s1106_s10, %s1159_s3 }
 0x32b   : > { %p810_p1 = scmp.lt.u32.totalorder %s808_s19, %s804_s7  ;;  %p812_p6 = scmp.lt.u32.totalorder %s804_s7, %s1106_s10 }
 0x32c   : > { %p806_p5 = pnand %p805_p4, %p1166_p11 }
 0x32d   : > { %p811_p3 = por %p810_p1, %p809_p9 }
 0x32e   : > { %p807_p7 = pneg %p806_p5 }
 0x32f   : > { %p813_p12 = por %p812_p6, %p811_p3 }
 0x331   : > { %p814_p13 = pnand %p813_p12, %p807_p7 }
 0x333   : > { %817 = shalt.err (!%p814_p13)
}
 0x334   : > { %s865_s26 = smov 256   ;;  %s866_s27 = smov 16  }
 0x335   : > { %705 = dma.vmem_to_hbm [thread:$0]  (%p1166_p11), %s1108_s29, 2048, %s1106_s10, %s557_s16, %s865_s26, %s865_s26, %s866_s27  }
 0x336 PF: > { %s586_s28 = sand.u32 1, %s844_s12   ;;  %p1167_p8 = scmp.ne.s32.totalorder %s1164_s25, 0 }
 0x337   : > { %p1168_p10 = scmp.ge.s32.totalorder %s856_s15, 2  ;;  %s587_s30 = scalar_lea.sflag [#allocation4], %s586_s28 }
 0x339   : > { %p712_p0 = pnand %p1168_p10, %p1167_p8 }
 0x33b   : > { %839 = dma.done.wait (!%p712_p0), %s587_s30, 2048  }
 0x33c   : > { %841 = vsyncadd (!%p712_p0), %s587_s30, 4294965248  ;;  %p16_p2 = scmp.ge.s32.totalorder %s912_s18, 4   ;;  %s1169_s12 = smov %s848_s13 }
 0x33d   : > { %s1170_s13 = smov %s852_s14  ;;  %s1171_s14 = smov %s924_s21 }
 0x33e   : > { %s1172_s15 = smov %s912_s18  ;;  %18 = sbr.rel (!%p16_p2) target bundleno = 5 (0x5), region = 77 }
 0x345   :  { %592 = vsyncpa [#allocation3], 1 }
 0x346   :  { %594 = vsyncpa [#allocation3 + $0x1], 1 }
 0x347   :  { %595 = vsyncpa [#allocation4], 1 }
 0x348   :  { %597 = vsyncpa [#allocation4 + $0x1], 1 }

</bundles_post_ra>
